<compile_context>
chip_gen: v5e
topology: v5e:2x2
jax: 0.10.0
libtpu: 0.0.40
codegen_flags: <defaults>
</compile_context>

<pallas_src>
import functools

import numpy as np
import jax
import jax.numpy as jnp
from jax.experimental import pallas as pl
from jax.experimental.pallas import tpu as pltpu


# ----------------------------------------------------------------------------
# Kernel 1: pixel normalization   out = (x - mean[c]) * (1 / std[c])
# Grid: (B, cdiv(H, TH)). Each step touches a (1, C, TH, W) block; the channel
# loop is unrolled (C is small) with per-channel scalars read from SMEM.
# Pure HBM-bandwidth-bound: the in-kernel cast avoids a separate XLA astype
# pass over the whole image, and large row tiles amortize per-step overhead.
# ----------------------------------------------------------------------------
def _normalize_kernel(mean_ref, inv_std_ref, x_ref, o_ref):
    C = x_ref.shape[1]
    for c in range(C):                             # small static unroll
        xc = x_ref[0, c].astype(jnp.float32)       # cast in-kernel, not wrapper
        o_ref[0, c] = ((xc - mean_ref[c]) * inv_std_ref[c]).astype(o_ref.dtype)


def _pick_tile_h(H, W, C, in_bytes, out_bytes, budget=8 << 20):
    """Largest multiple-of-8 row tile whose (input + output) bytes fit budget."""
    if H < 8:
        return H                                   # block == full dim, allowed
    per_row = max(1, C * W * (in_bytes + out_bytes))
    th = (budget // per_row) // 8 * 8
    return max(8, min(th, (H // 8) * 8))


def pixel_normalize(x, pixel_mean, pixel_std, out_dtype=jnp.float32):
    """(x - mean) / std, input kept in its original dtype (uint8/bf16/f32 ok).

    out_dtype=jnp.bfloat16 halves HBM store traffic if the backbone accepts it.
    """
    B, C, H, W = x.shape
    in_bytes = np.dtype(x.dtype).itemsize
    out_bytes = np.dtype(out_dtype).itemsize
    th = _pick_tile_h(H, W, C, in_bytes, out_bytes)
    mean = pixel_mean.astype(jnp.float32)
    inv_std = (1.0 / pixel_std).astype(jnp.float32)   # multiply, never divide
    return pl.pallas_call(
        _normalize_kernel,
        out_shape=jax.ShapeDtypeStruct((B, C, H, W), out_dtype),
        grid=(B, pl.cdiv(H, th)),                     # partial last block ok
        in_specs=[
            pl.BlockSpec(memory_space=pltpu.MemorySpace.SMEM),   # mean   (C,)
            pl.BlockSpec(memory_space=pltpu.MemorySpace.SMEM),   # 1/std  (C,)
            pl.BlockSpec((1, C, th, W), lambda b, h: (b, 0, h, 0)),
        ],
        out_specs=pl.BlockSpec((1, C, th, W), lambda b, h: (b, 0, h, 0)),
        compiler_params=pltpu.CompilerParams(
            dimension_semantics=("parallel", "parallel"),
            vmem_limit_bytes=32 * 1024 * 1024),       # safe ceiling on v7x too
    )(mean, inv_std, x)


# ----------------------------------------------------------------------------
# Kernel 2 (fused): segment-mean phrase merge + phrase gather.
#   mask   (BP, tk)  : 0/1 segment mask per token block (exact in bf16)
#   acc    (BP, D)  += mask @ txt_block            (MXU, f32 accumulation)
#   merged (BP, D)   = acc * inv_len               (f32 post-scale)
#   phrase (N,  D)   = onehot(gidx) @ merged       (exact f32 one-hot MXU)
# Grid: (cdiv(BL, tk),) reduction over the token axis; outputs written only on
# the last step (P3 accumulator pattern).
# ----------------------------------------------------------------------------
def _merge_gather_kernel(total_tokens, row_lo_ref, row_hi_ref, inv_len_ref,
                         gidx_ref, txt_ref, merged_ref, phrase_ref, acc_ref):
    k = pl.program_id(0)
    BP, D = acc_ref.shape
    tk = txt_ref.shape[0]
    N = phrase_ref.shape[0]

    @pl.when(k == 0)
    def _init():
        acc_ref[...] = jnp.zeros_like(acc_ref)

    # 0/1 segment mask for this token block from iota + per-row bounds
    # (inv_len is applied AFTER the f32 accumulation, so the mask stays exact
    #  even in bf16).
    col = k * tk + jax.lax.broadcasted_iota(jnp.int32, (BP, tk), 1)
    mask = ((col >= row_lo_ref[...]) & (col < row_hi_ref[...])
            ).astype(txt_ref.dtype)

    tok = txt_ref[...]
    if total_tokens % tk != 0:
        # zero garbage rows of a partial last block before they hit the MXU
        row = k * tk + jax.lax.broadcasted_iota(jnp.int32, (tk, 1), 0)
        tok = jnp.where(row < total_tokens, tok, jnp.zeros_like(tok))

    acc_ref[...] += jnp.dot(mask, tok, preferred_element_type=jnp.float32)

    @pl.when(k == pl.num_programs(0) - 1)
    def _finalize():
        merged = acc_ref[...] * inv_len_ref[...]        # f32 segment mean
        merged_ref[...] = merged.astype(merged_ref.dtype)
        # exact one-hot gather; pad rows with len == 0 ARE the zero rows.
        # TODO(synk): if BP ever grows past a few hundred, replace this one-hot
        # matmul with a DMA / jnp.take gather.
        colj = jax.lax.broadcasted_iota(jnp.int32, (N, BP), 1)
        onehot = (colj == gidx_ref[...]).astype(jnp.float32)
        phrase_ref[...] = jnp.dot(
            onehot, merged, preferred_element_type=jnp.float32
        ).astype(phrase_ref.dtype)


def merge_and_gather(txt_hidden, starts, lens, phrasenum_idx, positions,
                     block_l=512):
    """Fused batch_merge_emb + phrase_hiddens.

    Returns (merged_padded, phrase):
      merged_padded : (B, P_pad, D) f32 padded phrase table (rows with len==0
                      are zero); slice [:, :P] lazily at the consumer.
      phrase        : (N, D) f32 == merged_padded[phrasenum_idx, positions].
    """
    B, L, D = txt_hidden.shape
    P = starts.shape[1]
    # P_pad >= P + 1 so position == P lands on an all-zero pad row.
    P_pad = ((P + 1 + 7) // 8) * 8
    BP, BL = B * P_pad, B * L

    starts_p = jnp.zeros((B, P_pad), jnp.int32).at[:, :P].set(
        starts.astype(jnp.int32))
    lens_p = jnp.zeros((B, P_pad), jnp.int32).at[:, :P].set(
        lens.astype(jnp.int32))
    base = (jnp.arange(B, dtype=jnp.int32) * L)[:, None]
    row_lo = (base + starts_p).reshape(BP, 1)
    row_hi = (base + starts_p + lens_p).reshape(BP, 1)
    inv_len = jnp.where(lens_p > 0,
                        1.0 / jnp.maximum(lens_p, 1).astype(jnp.float32),
                        0.0).reshape(BP, 1)
    gidx = (phrasenum_idx.astype(jnp.int32) * P_pad
            + positions.astype(jnp.int32)).reshape(-1, 1)
    N = gidx.shape[0]
    txt_flat = txt_hidden.reshape(BL, D)          # keep caller dtype (bf16 ok)

    tk = BL if BL <= block_l else block_l         # token-axis reduction tile
    kt = pl.cdiv(BL, tk)

    merged_flat, phrase = pl.pallas_call(
        functools.partial(_merge_gather_kernel, BL),
        out_shape=(jax.ShapeDtypeStruct((BP, D), jnp.float32),
                   jax.ShapeDtypeStruct((N, D), jnp.float32)),
        grid=(kt,),
        in_specs=[
            pl.BlockSpec((BP, 1), lambda k: (0, 0)),     # row_lo
            pl.BlockSpec((BP, 1), lambda k: (0, 0)),     # row_hi
            pl.BlockSpec((BP, 1), lambda k: (0, 0)),     # inv_len (f32)
            pl.BlockSpec((N, 1), lambda k: (0, 0)),      # gather indices
            pl.BlockSpec((tk, D), lambda k: (k, 0)),     # token block
        ],
        out_specs=(pl.BlockSpec((BP, D), lambda k: (0, 0)),
                   pl.BlockSpec((N, D), lambda k: (0, 0))),
        scratch_shapes=[pltpu.VMEM((BP, D), jnp.float32)],   # f32 accumulator
        compiler_params=pltpu.CompilerParams(
            dimension_semantics=("arbitrary",),
            vmem_limit_bytes=32 * 1024 * 1024),
    )(row_lo, row_hi, inv_len, gidx, txt_flat)

    # reshape only — no slice copy of the merged table.
    return merged_flat.reshape(B, P_pad, D), phrase


# ----------------------------------------------------------------------------
# Pure-numpy references (semantics of the PyTorch module).
# ----------------------------------------------------------------------------
def ref_normalize(x, mean, std):
    return (x - mean.reshape(1, -1, 1, 1)) / std.reshape(1, -1, 1, 1)


def ref_batch_merge_emb(txt, split_lists, P):
    B, L, D = txt.shape
    out = np.zeros((B, P, D), np.float32)
    for b, sl in enumerate(split_lists):
        off = 0
        for p, n in enumerate(sl):
            out[b, p] = txt[b, off:off + n].mean(0)
            off += n
    return out


def ref_phrase_hiddens(merged, idx, pos):
    B, P, D = merged.shape
    merged_z = np.concatenate([merged, np.zeros((B, 1, D), np.float32)], 1)
    return merged_z[idx, pos]


# ----------------------------------------------------------------------------
if __name__ == "__main__":
    key = jax.random.PRNGKey(0)
    k_img, k_txt = jax.random.split(key)

    # Small shapes consistent with the module (W multiple of 128 so image
    # stores are lane-dense; H multiple of 8 so row tiles are sublane-dense).
    B, C, H, W = 2, 3, 16, 256          # images, NCHW
    L, D, P, N = 16, 128, 4, 8          # tokens, hidden, max phrases, entities

    pixel_mean = jnp.array([103.530, 116.280, 123.675], jnp.float32)
    pixel_std = jnp.array([57.375, 57.120, 58.395], jnp.float32)

    images = jax.random.uniform(k_img, (B, C, H, W), jnp.float32) * 255.0
    # Token embeddings in bf16: mask matmul is exact 0/1 in bf16 with f32
    # accumulation, so only the caller's own bf16 token rounding remains.
    txt_hidden = jax.random.normal(k_txt, (B, L, D), jnp.bfloat16)

    # token_split_num_list -> static (B, P) starts / lens (host-side glue);
    # lens == 0 marks pad_sequence padding rows (zeros).
    split_lists = [[3, 5, 2, 4], [6, 4, 3]]
    starts_np = np.zeros((B, P), np.int32)
    lens_np = np.zeros((B, P), np.int32)
    for b, sl in enumerate(split_lists):
        off = 0
        for p, n in enumerate(sl):
            starts_np[b, p] = off
            lens_np[b, p] = n
            off += n
    starts = jnp.asarray(starts_np)
    lens = jnp.asarray(lens_np)

    # phrasenum_idx / positions; position == P selects the zero row.
    phrasenum_idx = jnp.array([0, 0, 0, 0, 1, 1, 1, 1], jnp.int32)
    positions = jnp.array([0, 1, 2, 3, 0, 1, 2, 4], jnp.int32)

    # --- run Pallas kernels ---
    norm_img = jax.block_until_ready(
        pixel_normalize(images, pixel_mean, pixel_std))
    merged_pad, phrase_feat = merge_and_gather(txt_hidden, starts, lens,
                                               phrasenum_idx, positions)
    merged_pad = jax.block_until_ready(merged_pad)
    phrase_feat = jax.block_until_ready(phrase_feat)

    # --- verify against pure-numpy references ---
    np.testing.assert_allclose(
        np.asarray(norm_img),
        ref_normalize(np.asarray(images), np.asarray(pixel_mean),
                      np.asarray(pixel_std)),
        rtol=1e-5, atol=1e-5)

    txt_np = np.asarray(txt_hidden).astype(np.float32)   # values the kernel saw
    ref_merged = ref_batch_merge_emb(txt_np, split_lists, P)
    np.testing.assert_allclose(np.asarray(merged_pad)[:, :P, :], ref_merged,
                               rtol=1e-5, atol=1e-5)
    np.testing.assert_allclose(
        np.asarray(phrase_feat),
        ref_phrase_hiddens(ref_merged, np.asarray(phrasenum_idx),
                           np.asarray(positions)),
        rtol=1e-5, atol=1e-5)

    print("KERNEL_OK")
</pallas_src>

<mosaic_0001>
module attributes {stable_mosaic.version = 11 : i64} {
  func.func @_normalize_kernel(%arg0: i32, %arg1: i32, %arg2: memref<3xf32, #tpu.memory_space<smem>>, %arg3: memref<3xf32, #tpu.memory_space<smem>>, %arg4: memref<1x3x16x256xf32, #tpu.memory_space<vmem>>, %arg5: memref<1x3x16x256xf32, #tpu.memory_space<vmem>>) attributes {dimension_semantics = [#tpu.dimension_semantics<parallel>, #tpu.dimension_semantics<parallel>], iteration_bounds = array<i64: 2, 1>, scalar_prefetch = 0 : i64, scratch_operands = 0 : i64, tpu.core_type = #tpu.core_type<tc>, window_params = [{transform_indices = @transform_0, window_bounds = array<i64: 3>}, {transform_indices = @transform_1, window_bounds = array<i64: 3>}, {transform_indices = @transform_2, window_bounds = array<i64: 1, 3, 16, 256>}, {transform_indices = @transform_3, window_bounds = array<i64: 1, 3, 16, 256>}]} {
    %c0 = arith.constant 0 : index
    %c0_0 = arith.constant 0 : index
    %c0_1 = arith.constant 0 : index
    %c0_2 = arith.constant 0 : index
    %0 = vector.load %arg4[%c0, %c0_0, %c0_1, %c0_2] : memref<1x3x16x256xf32, #tpu.memory_space<vmem>>, vector<1x1x16x256xf32>
    %1 = vector.shape_cast %0 : vector<1x1x16x256xf32> to vector<16x256xf32>
    %c0_3 = arith.constant 0 : index
    %2 = memref.load %arg2[%c0_3] : memref<3xf32, #tpu.memory_space<smem>>
    %3 = vector.broadcast %2 : f32 to vector<16x256xf32>
    %4 = arith.subf %1, %3 : vector<16x256xf32>
    %c0_4 = arith.constant 0 : index
    %5 = memref.load %arg3[%c0_4] : memref<3xf32, #tpu.memory_space<smem>>
    %6 = vector.broadcast %5 : f32 to vector<16x256xf32>
    %7 = arith.mulf %4, %6 : vector<16x256xf32>
    %c0_5 = arith.constant 0 : index
    %c0_6 = arith.constant 0 : index
    %c0_7 = arith.constant 0 : index
    %c0_8 = arith.constant 0 : index
    %8 = vector.load %arg5[%c0_5, %c0_6, %c0_7, %c0_8] : memref<1x3x16x256xf32, #tpu.memory_space<vmem>>, vector<1x1x16x256xf32>
    %9 = vector.shape_cast %8 : vector<1x1x16x256xf32> to vector<16x256xf32>
    %10 = vector.shape_cast %7 : vector<16x256xf32> to vector<1x1x16x256xf32>
    tpu.vector_store %arg5[%c0_5, %c0_6, %c0_7, %c0_8], %10 {strides = array<i32>} : memref<1x3x16x256xf32, #tpu.memory_space<vmem>>, vector<1x1x16x256xf32>,
    %c0_9 = arith.constant 0 : index
    %c1 = arith.constant 1 : index
    %c0_10 = arith.constant 0 : index
    %c0_11 = arith.constant 0 : index
    %11 = vector.load %arg4[%c0_9, %c1, %c0_10, %c0_11] : memref<1x3x16x256xf32, #tpu.memory_space<vmem>>, vector<1x1x16x256xf32>
    %12 = vector.shape_cast %11 : vector<1x1x16x256xf32> to vector<16x256xf32>
    %c1_12 = arith.constant 1 : index
    %13 = memref.load %arg2[%c1_12] : memref<3xf32, #tpu.memory_space<smem>>
    %14 = vector.broadcast %13 : f32 to vector<16x256xf32>
    %15 = arith.subf %12, %14 : vector<16x256xf32>
    %c1_13 = arith.constant 1 : index
    %16 = memref.load %arg3[%c1_13] : memref<3xf32, #tpu.memory_space<smem>>
    %17 = vector.broadcast %16 : f32 to vector<16x256xf32>
    %18 = arith.mulf %15, %17 : vector<16x256xf32>
    %c0_14 = arith.constant 0 : index
    %c1_15 = arith.constant 1 : index
    %c0_16 = arith.constant 0 : index
    %c0_17 = arith.constant 0 : index
    %19 = vector.load %arg5[%c0_14, %c1_15, %c0_16, %c0_17] : memref<1x3x16x256xf32, #tpu.memory_space<vmem>>, vector<1x1x16x256xf32>
    %20 = vector.shape_cast %19 : vector<1x1x16x256xf32> to vector<16x256xf32>
    %21 = vector.shape_cast %18 : vector<16x256xf32> to vector<1x1x16x256xf32>
    tpu.vector_store %arg5[%c0_14, %c1_15, %c0_16, %c0_17], %21 {strides = array<i32>} : memref<1x3x16x256xf32, #tpu.memory_space<vmem>>, vector<1x1x16x256xf32>,
    %c0_18 = arith.constant 0 : index
    %c2 = arith.constant 2 : index
    %c0_19 = arith.constant 0 : index
    %c0_20 = arith.constant 0 : index
    %22 = vector.load %arg4[%c0_18, %c2, %c0_19, %c0_20] : memref<1x3x16x256xf32, #tpu.memory_space<vmem>>, vector<1x1x16x256xf32>
    %23 = vector.shape_cast %22 : vector<1x1x16x256xf32> to vector<16x256xf32>
    %c2_21 = arith.constant 2 : index
    %24 = memref.load %arg2[%c2_21] : memref<3xf32, #tpu.memory_space<smem>>
    %25 = vector.broadcast %24 : f32 to vector<16x256xf32>
    %26 = arith.subf %23, %25 : vector<16x256xf32>
    %c2_22 = arith.constant 2 : index
    %27 = memref.load %arg3[%c2_22] : memref<3xf32, #tpu.memory_space<smem>>
    %28 = vector.broadcast %27 : f32 to vector<16x256xf32>
    %29 = arith.mulf %26, %28 : vector<16x256xf32>
    %c0_23 = arith.constant 0 : index
    %c2_24 = arith.constant 2 : index
    %c0_25 = arith.constant 0 : index
    %c0_26 = arith.constant 0 : index
    %30 = vector.load %arg5[%c0_23, %c2_24, %c0_25, %c0_26] : memref<1x3x16x256xf32, #tpu.memory_space<vmem>>, vector<1x1x16x256xf32>
    %31 = vector.shape_cast %30 : vector<1x1x16x256xf32> to vector<16x256xf32>
    %32 = vector.shape_cast %29 : vector<16x256xf32> to vector<1x1x16x256xf32>
    tpu.vector_store %arg5[%c0_23, %c2_24, %c0_25, %c0_26], %32 {strides = array<i32>} : memref<1x3x16x256xf32, #tpu.memory_space<vmem>>, vector<1x1x16x256xf32>,
    return
  }
  func.func @transform_0(%arg0: i32, %arg1: i32) -> i32 {
    %c0_i32 = arith.constant 0 : i32
    %c0_i32_0 = arith.constant 0 : i32
    return %c0_i32 : i32
  }
  func.func @transform_1(%arg0: i32, %arg1: i32) -> i32 {
    %c0_i32 = arith.constant 0 : i32
    %c0_i32_0 = arith.constant 0 : i32
    return %c0_i32 : i32
  }
  func.func @transform_2(%arg0: i32, %arg1: i32) -> (i32, i32, i32, i32) {
    %c0_i32 = arith.constant 0 : i32
    %c0_i32_0 = arith.constant 0 : i32
    %c0_i32_1 = arith.constant 0 : i32
    return %arg0, %c0_i32, %arg1, %c0_i32_0 : i32, i32, i32, i32
  }
  func.func @transform_3(%arg0: i32, %arg1: i32) -> (i32, i32, i32, i32) {
    %c0_i32 = arith.constant 0 : i32
    %c0_i32_0 = arith.constant 0 : i32
    %c0_i32_1 = arith.constant 0 : i32
    return %arg0, %c0_i32, %arg1, %c0_i32_0 : i32, i32, i32, i32
  }
}

</mosaic_0001>

<bundles_post_ra>
// kernel: tpu_custom_call.1
= control target key start
LH: loop header
LB: loop body
LE: loop exit
PB: predicated region body
PF: predicated region fallthrough
CT: control target
= control target key end

     0   :  { %s927_s0 = inlined_call_operand.hbm [shape: f32[3], index: 0, kind: input, shape index: {}]   ;;  %s928_s1 = inlined_call_operand.hbm [shape: f32[3], index: 1, kind: input, shape index: {}]   ;;  %s929_s2 = inlined_call_operand.hbm [shape: f32[2,3,16,256], index: 2, kind: input, shape index: {}]   ;;  %s930_s3 = inlined_call_operand.hbm [shape: f32[2,3,16,256], index: 3, kind: output, shape index: {}]  }
   0x1   :  { %931 = sst [smem:[#allocation14_spill]] %s927_s0 }
   0x2   :  { %8 = vsyncpa [#allocation5], 0 }
   0x3   :  { %9 = vsyncpa [#allocation7], 0 }
   0x4   :  { %10 = vsyncpa [#allocation3], 0 }
   0x5   :  { %12 = vsyncpa [#allocation3 + $0x1], 0 }
   0x6   :  { %13 = vsyncpa [#allocation4], 0 }
   0x7   :  { %15 = vsyncpa [#allocation4 + $0x1], 0  ;;  %s733_s12 = smov 0   ;;  %s735_s13 = smov 0  }
   0x8   :  { %s737_s14 = smov 0   ;;  %s739_s15 = smov 0  }
   0x9   :  { %s741_s16 = smov 0   ;;  %s743_s17 = smov 0  }
   0xa LB: > { %s431_s18 = sadd.s32 4294967295, %s705_s17   ;;  %s432_s19 = sadd.s32 4294967294, %s705_s17   ;;  %s705_s17 = sphi %s743_s17, %s21_s17   ;;  %s701_s16 = sphi %s741_s16, %s944_s16   ;;  %s697_s15 = sphi %s739_s15, %s943_s15   ;;  %s693_s14 = sphi %s737_s14, %s942_s14   ;;  %s689_s13 = sphi %s735_s13, %s941_s13   ;;  %s685_s12 = sphi %s733_s12, %s940_s12  }
   0xb   : > { %s84_s20 = sadd.s32 1, %s693_s14  ;;  %p91_p0 = scmp.ne.s32.totalorder %s693_s14, %s689_s13 }
   0xc   : > { %p92_p1 = scmp.eq.s32.totalorder %s705_s17, 0  ;;  %p97_p2 = scmp.ne.s32.totalorder %s689_s13, %s685_s12 }
   0xd   : > { %p771_p3 = scmp.eq.s32.totalorder %s431_s18, 0  ;;  %p123_p4 = scmp.eq.s32.totalorder %s431_s18, 1 }
   0xe   : > { %p775_p5 = por %p92_p1, %p91_p0  ;;  %p129_p6 = scmp.eq.s32.totalorder %s432_s19, 1 }
   0xf   : > { %p781_p7 = por %p771_p3, %p97_p2  ;;  %p785_p8 = por %p123_p4, %p91_p0 }
  0x10   : > { %p789_p9 = por %p129_p6, %p97_p2  ;;  %p433_p10 = scmp.ge.s32.totalorder %s705_s17, 1 }
  0x11   : > { %p136_p11 = scmp.lt.s32.totalorder %s705_s17, 3  ;;  %s937_s0 = sld [smem:[#allocation14_spill]] }
  0x12   : > { %p436_p13 = scmp.ge.s32.totalorder %s705_s17, 2  ;;  %p497_p0 = scmp.lt.s32.totalorder %s705_s17, 2 }
  0x13   : > { %p798_p12 = pnand %p433_p10, %p136_p11  ;;  %s158_s5 = sshll.u32 %s928_s1, 4  ;;  %s159_s5 = int_to_ptr.hbm [resolvable:$true] %s158_s5 }
  0x14   : > { %p811_p2 = pnand %p497_p0, %p775_p5  ;;  %s707_s7 = smov [#allocation2]  }
  0x15   : > { %p480_p1 = pneg %p798_p12  ;;  %s708_s8 = smov [#allocation6]  }
  0x16   : > { %s33_s9 = sadd.s32 1, %s701_s16  ;;  %s169_s10 = sand.u32 1, %s693_s14  }
  0x17   : > { %s148_s28 = sshll.u32 %s937_s0, 4  ;;  %p481_p4 = pnand %p480_p1, %p771_p3  ;;  %s149_s28 = int_to_ptr.hbm [resolvable:$true] %s148_s28 }
  0x18   : > { %p35_p6 = scmp.ge.s32.totalorder %s33_s9, 2  ;;  %s464_s11 = smul.u32 96, %s169_s10 }
  0x19   : > { %483 = dma.hbm_to_smem (!%p481_p4), %s149_s28, 16, %s707_s7, [#allocation5]  }
  0x1a   : > { %486 = dma.hbm_to_smem (!%p481_p4), %s159_s5, 16, %s708_s8, [#allocation7]  }
  0x1b   : > { %s946_s9 = smov (%p35_p6, %s33_s9), 0  ;;  %s465_s18 = smul.u32 96, %s701_s16 }
  0x1c   : > { %s79_s19 = ssub.s32 %s701_s16, %s946_s9  ;;  %s173_s22 = scalar_lea.vmem [#allocation8], %s464_s11 }
  0x1d   : > { %s184_s26 = sshll.u32 %s173_s22, 4  ;;  %p82_p5 = scmp.eq.s32.totalorder %s79_s19, 0  ;;  %s185_s26 = int_to_ptr.vmem [resolvable:$true] %s184_s26 }
  0x1e   : > { %s181_s28 = scalar_lea.hbm %s929_s2, %s465_s18  ;;  %s170_s7 = scalar_lea.sflag [#allocation3], %s169_s10 }
  0x1f   : > { %s182_s4 = sshll.u32 %s181_s28, 4  ;;  %s709_s8 = smov 256   ;;  %s183_s4 = int_to_ptr.hbm [resolvable:$true] %s182_s4 }
  0x20   : > { %s830_s5 = scalar_select %p82_p5, %s693_s14, %s84_s20  }
  0x21   : > { %s710_s0 = smov 16   ;;  %196 = sbr.rel (%p798_p12) target bundleno = 74 (0x4a), region = 32 }
  0x22   : > { %490 = dma.hbm_to_vmem [thread:$0]  (!%p811_p2), %s183_s4, 1536, %s185_s26, %s170_s7, %s709_s8, %s709_s8, %s710_s0  }
  0x26   : > { %668 = dma.done.wait (%p771_p3), [#allocation5], 16  }
  0x27   : > { %670 = vsyncadd (%p771_p3), [#allocation5], 4294967280 }
  0x28   : > { %672 = dma.done.wait (%p771_p3), [#allocation7], 16  }
  0x29   : > { %674 = vsyncadd (%p771_p3), [#allocation7], 4294967280  ;;  %s845_s20 = sand.u32 1, %s689_s13  }
  0x2a   : > { %s466_s0 = smul.u32 96, %s845_s20  ;;  %s209_s29 = scalar_lea.sflag [#allocation3], %s845_s20 }
  0x2c   : > { %s851_s6 = scalar_lea.vmem [#allocation8], %s466_s0 }
  0x2d   : > { %676 = dma.done.wait (%p781_p7), %s209_s29, 1536  }
  0x2e   : > { %678 = vsyncadd (%p781_p7), %s209_s29, 4294965760 }
  0x2f   : > { %218 = sfence }
  0x30   : > { %s243_s21 = sld [smem:[#allocation2]]  ;;  %v239_v0 = vld [vmem:[%s851_s6] sm:$0xff]  ;;  %v240_v1 = vld [vmem:[%s851_s6 + $0x8] sm:$0xff]  ;;  %v241_v2 = vld [vmem:[%s851_s6 + $0x10] sm:$0xff]  ;;  %s467_s22 = smul.u32 96, %s697_s15 }
  0x31   : > { %s249_s10 = sld [smem:[#allocation6]]  ;;  %v242_v3 = vld [vmem:[%s851_s6 + $0x18] sm:$0xff]  ;;  %v441_v5 = vld [vmem:[%s851_s6 + $0x20] sm:$0xff]  ;;  %v442_v10 = vld [vmem:[%s851_s6 + $0x28] sm:$0xff]  ;;  %s873_s26 = scalar_lea.vmem [#allocation9], %s466_s0 }
  0x32   : > { %s445_s11 = sld [smem:[#allocation2 + $0x1]]  ;;  %v443_v11 = vld [vmem:[%s851_s6 + $0x30] sm:$0xff]  ;;  %v444_v14 = vld [vmem:[%s851_s6 + $0x38] sm:$0xff]  ;;  %v451_v19 = vld [vmem:[%s851_s6 + $0x40] sm:$0xff]  ;;  %s318_s30 = scalar_lea.hbm %s930_s3, %s467_s22 }
  0x33   : > { %s446_s18 = sld [smem:[#allocation6 + $0x1]]  ;;  %v452_v20 = vld [vmem:[%s851_s6 + $0x48] sm:$0xff]  ;;  %v453_v25 = vld [vmem:[%s851_s6 + $0x50] sm:$0xff]  ;;  %v454_v29 = vld [vmem:[%s851_s6 + $0x58] sm:$0xff]  ;;  %s319_s28 = sshll.u32 %s873_s26, 4  ;;  %s320_s28 = int_to_ptr.vmem [resolvable:$true] %s319_s28 }
  0x34   : > { %s455_s19 = sld [smem:[#allocation2 + $0x2]]  ;;  %s321_s4 = sshll.u32 %s318_s30, 4  ;;  %s322_s4 = int_to_ptr.hbm [resolvable:$true] %s321_s4 }
  0x35   : > { %s861_s23 = sld [smem:[#allocation6 + $0x2]]  ;;  %s304_s7 = scalar_lea.sflag [#allocation4], %s845_s20 }
  0x36   : > { %v244_v4 = vstv %s243_s21  ;;  %s629_s8 = sshra.s32 %s322_s4, 4  ;;  %s635_s21 = scalar_lea.hbm %s930_s3, 192  ;;  %s630_s8 = int_to_ptr.hbm [resolvable:$true] %s629_s8 }
  0x37   : > { %v245_v6 = vsub.f32 %v239_v0, %v244_v4  ;;  %v250_v7 = vstv %s249_s10  ;;  %v246_v8 = vsub.f32 %v240_v1, %v244_v4  ;;  %v247_v9 = vsub.f32 %v241_v2, %v244_v4  ;;  %s631_s0 = scalar_lea.hbm %s630_s8, 96  ;;  %p636_p11 = scmp.lt.s32.totalorder %s630_s8, %s930_s3 }
  0x38   : > { %v248_v12 = vsub.f32 %v242_v3, %v244_v4  ;;  %v265_v13 = vstv %s445_s11  ;;  %p632_p3 = scmp.ne.s32.totalorder %s630_s8, %s631_s0  ;;  %p637_p12 = scmp.lt.s32.totalorder %s635_s21, %s631_s0 }
  0x39   : > { %v251_v15 = vmul.f32 %v250_v7, %v245_v6  ;;  %v252_v16 = vmul.f32 %v250_v7, %v246_v8  ;;  %v253_v17 = vmul.f32 %v250_v7, %v247_v9  ;;  %v266_v18 = vsub.f32 %v441_v5, %v265_v13 }
  0x3a   : > { %v254_v21 = vmul.f32 %v250_v7, %v248_v12  ;;  %v271_v22 = vstv %s446_s18  ;;  %v267_v23 = vsub.f32 %v442_v10, %v265_v13  ;;  %v268_v24 = vsub.f32 %v443_v11, %v265_v13  ;;  %p633_p7 = pnand %p632_p3, %p785_p8  ;;  %p638_p0 = por %p637_p12, %p636_p11 }
  0x3b   : > { %255 = vst [vmem:[%s873_s26] sm:$0xff] %v251_v15  ;;  %v272_v26 = vmul.f32 %v271_v22, %v266_v18  ;;  %v269_v27 = vsub.f32 %v444_v14, %v265_v13  ;;  %v287_v28 = vstv %s455_s19  ;;  %v293_v32 = vstv %s861_s23 }
  0x3c   : > { %256 = vst [vmem:[%s873_s26 + $0x8] sm:$0xff] %v252_v16  ;;  %v273_v30 = vmul.f32 %v271_v22, %v267_v23  ;;  %v288_v31 = vsub.f32 %v451_v19, %v287_v28  ;;  %v289_v33 = vsub.f32 %v452_v20, %v287_v28  ;;  %v274_v34 = vmul.f32 %v271_v22, %v268_v24  ;;  %p634_p10 = pneg %p633_p7 }
  0x3d   : > { %257 = vst [vmem:[%s873_s26 + $0x10] sm:$0xff] %v253_v17  ;;  %v290_v35 = vsub.f32 %v453_v25, %v287_v28  ;;  %v275_v36 = vmul.f32 %v271_v22, %v269_v27  ;;  %v291_v37 = vsub.f32 %v454_v29, %v287_v28 }
  0x3e   : > { %258 = vst [vmem:[%s873_s26 + $0x18] sm:$0xff] %v254_v21  ;;  %v294_v38 = vmul.f32 %v293_v32, %v288_v31  ;;  %v295_v39 = vmul.f32 %v293_v32, %v289_v33  ;;  %p639_p1 = pnand %p638_p0, %p634_p10 }
  0x3f   : > { %447 = vst [vmem:[%s873_s26 + $0x20] sm:$0xff] %v272_v26  ;;  %v296_v40 = vmul.f32 %v293_v32, %v290_v35  ;;  %v297_v41 = vmul.f32 %v293_v32, %v291_v37 }
  0x40   : > { %448 = vst [vmem:[%s873_s26 + $0x28] sm:$0xff] %v273_v30 }
  0x41   : > { %449 = vst [vmem:[%s873_s26 + $0x30] sm:$0xff] %v274_v34 }
  0x42   : > { %450 = vst [vmem:[%s873_s26 + $0x38] sm:$0xff] %v275_v36 }
  0x43   : > { %457 = vst [vmem:[%s873_s26 + $0x40] sm:$0xff] %v294_v38 }
  0x44   : > { %458 = vst [vmem:[%s873_s26 + $0x48] sm:$0xff] %v295_v39 }
  0x45   : > { %459 = vst [vmem:[%s873_s26 + $0x50] sm:$0xff] %v296_v40 }
  0x46   : > { %460 = vst [vmem:[%s873_s26 + $0x58] sm:$0xff] %v297_v41 }
  0x47   : > { %642 = shalt.err (!%p639_p1)
}
  0x48   : > { %s711_s20 = smov 256   ;;  %s712_s18 = smov 16  }
  0x49   : > { %478 = dma.vmem_to_hbm [thread:$0]  (%p785_p8), %s320_s28, 1536, %s322_s4, %s304_s7, %s711_s20, %s711_s20, %s712_s18  }
  0x4a PF: > { %s336_s19 = sand.u32 1, %s685_s12   ;;  %p492_p2 = pnand %p436_p13, %p789_p9 }
  0x4b   : > { %s337_s23 = scalar_lea.sflag [#allocation4], %s336_s19 }
  0x4c   : > { %p493_p4 = pneg %p492_p2 }
  0x4e   : > { %680 = dma.done.wait (%p493_p4), %s337_s23, 1536  }
  0x4f   : > { %682 = vsyncadd (%p493_p4), %s337_s23, 4294965760  ;;  %s21_s17 = sadd.s32 1, %s705_s17   ;;  %s940_s12 = smov %s689_s13 }
  0x50   : > { %p18_p6 = scmp.ge.s32.totalorder %s21_s17, 4   ;;  %s941_s13 = smov %s693_s14 }
  0x51   : > { %s942_s14 = smov %s830_s5  ;;  %s943_s15 = smov %s701_s16 }
  0x52   : > { %s944_s16 = smov %s946_s9  ;;  %20 = sbr.rel (!%p18_p6) target bundleno = 10 (0xa), region = 90 }
  0x57   :  { %343 = vsyncpa [#allocation3], 1 }
  0x58   :  { %345 = vsyncpa [#allocation3 + $0x1], 1 }
  0x59   :  { %346 = vsyncpa [#allocation4], 1 }
  0x5a   :  { %348 = vsyncpa [#allocation4 + $0x1], 1 }
  0x5b   :  { %349 = vsyncpa [#allocation5], 1 }
  0x5c   :  { %351 = vsyncpa [#allocation5 + $0x1], 1 }
  0x5d   :  { %352 = vsyncpa [#allocation7], 1 }

</bundles_post_ra>
